<compile_context>
chip_gen: v6e
topology: v6e:2x2x1
jax: 0.10.0
libtpu: 0.0.40
codegen_flags: <defaults>
</compile_context>

<pallas_src>
import functools
import math

import jax
import jax.numpy as jnp
from jax.experimental import pallas as pl
from jax.experimental.pallas import tpu as pltpu


def _mlp_kernel(x_ref, w1_ref, b1_ref, w2_ref, b2_ref, o_ref, *, chunk):
    # x_ref:  [D_in, TB]    batch on the lane axis
    # w1_ref: [H, D_in]     first Linear weight (PyTorch [out, in] layout)
    # b1_ref: [H, 1]
    # w2_ref: [H, D_out]    second Linear weight stored as a column (D_out == 1)
    # b2_ref: [D_out, 1]
    # o_ref:  [D_out, TB]
    d_in, tb = x_ref.shape
    n_chunks = tb // chunk

    w1 = w1_ref[...]                                      # [H, D_in]
    b1 = b1_ref[...]                                      # [H, 1]
    w2 = w2_ref[...]                                      # [H, 1]
    b2 = b2_ref[...]                                      # [1, 1]

    # Fused per-chunk pipeline: the [H, chunk] hidden lives only in vregs,
    # never as a full [H, TB] VMEM intermediate.  Static unroll (trace-time
    # loop) keeps everything visible to the LLO scheduler.
    for c in range(n_chunks):
        lo = c * chunk
        xc = x_ref[:, lo:lo + chunk]                      # [D_in, chunk]

        # First layer: K = D_in = 2 contraction as VPU broadcast FMAs with the
        # bias folded in (no MXU push/pop for a tiny contraction).
        h = b1                                            # [H, 1] -> broadcasts over lanes
        for d in range(d_in):                             # static unroll over D_in
            h = h + w1[:, d:d + 1] * xc[d:d + 1, :]       # [H,1] * [1,chunk] -> [H,chunk]
        h = jnp.tanh(h)                                   # EUP: the binding unit

        # Second layer (D_out == 1): multiply + sublane reduce (VPU/XLU).
        z = jnp.sum(h * w2, axis=0, keepdims=True) + b2   # [1, chunk]

        # sigmoid(z) == 0.5 * tanh(0.5 * z) + 0.5: single EUP op.
        o_ref[:, lo:lo + chunk] = (0.5 * jnp.tanh(0.5 * z) + 0.5).astype(o_ref.dtype)


def simple_classifier(x, w1, b1, w2, b2):
    """Forward pass of SimpleClassifier.

    x:  [B, D_in] f32
    w1: [H, D_in] f32   (nn.Linear weight layout: [out_features, in_features])
    b1: [H]       f32
    w2: [D_out, H] f32
    b2: [D_out]   f32
    Returns sigmoid(tanh(x @ w1.T + b1) @ w2.T + b2): [B, D_out] f32.
    """
    B, d_in = x.shape
    H = w1.shape[0]
    d_out = w2.shape[0]
    assert d_out == 1, "kernel specializes the D_out == 1 case of the spec"

    # Lane tile: largest power of two <= 8192 (VMEM-safe on all generations,
    # including v5e's 16 MiB scoped default and v7x's 64 MiB VMEM) that still
    # leaves >= 2 grid steps for moderate batches (megacore on v7x).
    tb = int(min(8192, max(128, pl.next_power_of_2(max(1, (B + 1) // 2)))))
    bp = pl.cdiv(B, tb) * tb                # batch padded to a multiple of tb
    grid = bp // tb
    chunk = min(256, tb)                    # in-kernel lane chunk (fits in vregs)

    # Lane-dense layout: batch on the last (lane) axis; pad to bp with zeros
    # (padded lanes are computed and discarded).  Transpose + pad fuse into a
    # single small XLA copy.
    x_t = x.T                               # [D_in, B]
    if bp != B:
        x_t = jnp.pad(x_t, ((0, 0), (0, bp - B)))
    b1_c = b1.reshape(H, 1)                 # [H, 1]
    w2_c = w2.reshape(H, d_out)             # [H, 1] (pure reshape, same data)
    b2_c = b2.reshape(d_out, 1)             # [1, 1]

    kernel = functools.partial(_mlp_kernel, chunk=chunk)

    # Only x and out stream through the pipeline; weights/biases have constant
    # index_maps so they stay VMEM-resident across grid steps.
    out_t = pl.pallas_call(
        kernel,
        out_shape=jax.ShapeDtypeStruct((d_out, bp), x.dtype),
        grid=(grid,),
        in_specs=[
            pl.BlockSpec((d_in, tb), lambda i: (0, i)),
            pl.BlockSpec((H, d_in), lambda i: (0, 0)),
            pl.BlockSpec((H, 1), lambda i: (0, 0)),
            pl.BlockSpec((H, d_out), lambda i: (0, 0)),
            pl.BlockSpec((d_out, 1), lambda i: (0, 0)),
        ],
        out_specs=pl.BlockSpec((d_out, tb), lambda i: (0, i)),
        compiler_params=pltpu.CompilerParams(
            dimension_semantics=("parallel",)),
    )(x_t, w1, b1_c, w2_c, b2_c)

    return out_t[:, :B].T                   # [B, D_out]


def init_params(key, input_dim, hidden_dim, output_dim):
    """Deterministic init mimicking nn.Linear's default U(-1/sqrt(fan_in), ...)."""
    k1, k2, k3, k4 = jax.random.split(key, 4)
    lim1 = 1.0 / math.sqrt(input_dim)
    lim2 = 1.0 / math.sqrt(hidden_dim)
    w1 = jax.random.uniform(k1, (hidden_dim, input_dim), jnp.float32, -lim1, lim1)
    b1 = jax.random.uniform(k2, (hidden_dim,), jnp.float32, -lim1, lim1)
    w2 = jax.random.uniform(k3, (output_dim, hidden_dim), jnp.float32, -lim2, lim2)
    b2 = jax.random.uniform(k4, (output_dim,), jnp.float32, -lim2, lim2)
    return w1, b1, w2, b2


if __name__ == "__main__":
    input_dim, hidden_dim, output_dim = 2, 100, 1

    key = jax.random.PRNGKey(0)
    kp, kx1, kx2, kx3 = jax.random.split(key, 4)
    w1, b1, w2, b2 = init_params(kp, input_dim, hidden_dim, output_dim)

    def reference(xv):
        return jax.nn.sigmoid(jnp.tanh(xv @ w1.T + b1) @ w2.T + b2)

    # Small batch (single-step grid), ragged batch (pad path), and a larger
    # batch (2-step parallel grid) all go through the same tiled kernel.
    for kx, bsz in ((kx1, 8), (kx2, 300), (kx3, 2048)):
        x = jax.random.normal(kx, (bsz, input_dim), jnp.float32)
        out = simple_classifier(x, w1, b1, w2, b2)
        jax.block_until_ready(out)
        assert out.shape == (bsz, output_dim)
        assert jnp.allclose(out, reference(x), atol=1e-5, rtol=1e-5)

    print("KERNEL_OK")
</pallas_src>

<mosaic_0001>
module attributes {stable_mosaic.version = 11 : i64} {
  func.func @_mlp_kernel(%arg0: i32, %arg1: memref<2x128xf32, #tpu.memory_space<vmem>>, %arg2: memref<100x2xf32, #tpu.memory_space<vmem>>, %arg3: memref<100x1xf32, #tpu.memory_space<vmem>>, %arg4: memref<100x1xf32, #tpu.memory_space<vmem>>, %arg5: memref<1x1xf32, #tpu.memory_space<vmem>>, %arg6: memref<1x128xf32, #tpu.memory_space<vmem>>) attributes {dimension_semantics = [#tpu.dimension_semantics<parallel>], iteration_bounds = array<i64: 1>, scalar_prefetch = 0 : i64, scratch_operands = 0 : i64, tpu.core_type = #tpu.core_type<tc>, window_params = [{transform_indices = @transform_0, window_bounds = array<i64: 2, 128>}, {pipeline_mode = #tpu.pipeline_mode<synchronous>, transform_indices = @transform_1, window_bounds = array<i64: 100, 2>}, {pipeline_mode = #tpu.pipeline_mode<synchronous>, transform_indices = @transform_2, window_bounds = array<i64: 100, 1>}, {pipeline_mode = #tpu.pipeline_mode<synchronous>, transform_indices = @transform_3, window_bounds = array<i64: 100, 1>}, {pipeline_mode = #tpu.pipeline_mode<synchronous>, transform_indices = @transform_4, window_bounds = array<i64: 1, 1>}, {transform_indices = @transform_5, window_bounds = array<i64: 1, 128>}]} {
    %c0 = arith.constant 0 : index
    %c0_0 = arith.constant 0 : index
    %0 = vector.load %arg2[%c0, %c0_0] : memref<100x2xf32, #tpu.memory_space<vmem>>, vector<100x2xf32>
    %c0_1 = arith.constant 0 : index
    %c0_2 = arith.constant 0 : index
    %1 = vector.load %arg3[%c0_1, %c0_2] : memref<100x1xf32, #tpu.memory_space<vmem>>, vector<100x1xf32>
    %c0_3 = arith.constant 0 : index
    %c0_4 = arith.constant 0 : index
    %2 = vector.load %arg4[%c0_3, %c0_4] : memref<100x1xf32, #tpu.memory_space<vmem>>, vector<100x1xf32>
    %c0_5 = arith.constant 0 : index
    %c0_6 = arith.constant 0 : index
    %3 = vector.load %arg5[%c0_5, %c0_6] : memref<1x1xf32, #tpu.memory_space<vmem>>, vector<1x1xf32>
    %c0_7 = arith.constant 0 : index
    %c0_8 = arith.constant 0 : index
    %4 = vector.load %arg1[%c0_7, %c0_8] : memref<2x128xf32, #tpu.memory_space<vmem>>, vector<2x128xf32>
    %5 = vector.extract_strided_slice %0 {offsets = [0, 0], sizes = [100, 1], strides = [1, 1]} : vector<100x2xf32> to vector<100x1xf32>
    %6 = vector.extract_strided_slice %4 {offsets = [0, 0], sizes = [1, 128], strides = [1, 1]} : vector<2x128xf32> to vector<1x128xf32>
    %7 = vector.broadcast %5 : vector<100x1xf32> to vector<100x128xf32>
    %8 = vector.broadcast %6 : vector<1x128xf32> to vector<100x128xf32>
    %9 = arith.mulf %7, %8 : vector<100x128xf32>
    %10 = vector.broadcast %1 : vector<100x1xf32> to vector<100x128xf32>
    %11 = arith.addf %10, %9 : vector<100x128xf32>
    %12 = vector.extract_strided_slice %0 {offsets = [0, 1], sizes = [100, 1], strides = [1, 1]} : vector<100x2xf32> to vector<100x1xf32>
    %13 = vector.extract_strided_slice %4 {offsets = [1, 0], sizes = [1, 128], strides = [1, 1]} : vector<2x128xf32> to vector<1x128xf32>
    %14 = vector.broadcast %12 : vector<100x1xf32> to vector<100x128xf32>
    %15 = vector.broadcast %13 : vector<1x128xf32> to vector<100x128xf32>
    %16 = arith.mulf %14, %15 : vector<100x128xf32>
    %17 = arith.addf %11, %16 : vector<100x128xf32>
    %18 = math.tanh %17 : vector<100x128xf32>
    %19 = vector.broadcast %2 : vector<100x1xf32> to vector<100x128xf32>
    %20 = arith.mulf %18, %19 : vector<100x128xf32>
    %cst = arith.constant dense<0.000000e+00> : vector<128xf32>
    %21 = vector.multi_reduction <add>, %20, %cst [0] : vector<100x128xf32> to vector<128xf32>
    %22 = vector.shape_cast %21 : vector<128xf32> to vector<1x128xf32>
    %23 = vector.broadcast %3 : vector<1x1xf32> to vector<1x128xf32>
    %24 = arith.addf %22, %23 : vector<1x128xf32>
    %cst_9 = arith.constant 5.000000e-01 : f32
    %25 = vector.broadcast %cst_9 : f32 to vector<1x128xf32>
    %26 = arith.mulf %25, %24 : vector<1x128xf32>
    %27 = math.tanh %26 : vector<1x128xf32>
    %cst_10 = arith.constant 5.000000e-01 : f32
    %28 = vector.broadcast %cst_10 : f32 to vector<1x128xf32>
    %29 = arith.mulf %28, %27 : vector<1x128xf32>
    %cst_11 = arith.constant 5.000000e-01 : f32
    %30 = vector.broadcast %cst_11 : f32 to vector<1x128xf32>
    %31 = arith.addf %29, %30 : vector<1x128xf32>
    %c0_12 = arith.constant 0 : index
    %c0_13 = arith.constant 0 : index
    %32 = vector.load %arg6[%c0_12, %c0_13] : memref<1x128xf32, #tpu.memory_space<vmem>>, vector<1x128xf32>
    tpu.vector_store %arg6[%c0_12, %c0_13], %31 {strides = array<i32>} : memref<1x128xf32, #tpu.memory_space<vmem>>, vector<1x128xf32>,
    return
  }
  func.func @transform_0(%arg0: i32) -> (i32, i32) {
    %c0_i32 = arith.constant 0 : i32
    %c0_i32_0 = arith.constant 0 : i32
    return %c0_i32, %arg0 : i32, i32
  }
  func.func @transform_1(%arg0: i32) -> (i32, i32) {
    %c0_i32 = arith.constant 0 : i32
    %c0_i32_0 = arith.constant 0 : i32
    %c0_i32_1 = arith.constant 0 : i32
    return %c0_i32, %c0_i32_0 : i32, i32
  }
  func.func @transform_2(%arg0: i32) -> (i32, i32) {
    %c0_i32 = arith.constant 0 : i32
    %c0_i32_0 = arith.constant 0 : i32
    %c0_i32_1 = arith.constant 0 : i32
    return %c0_i32, %c0_i32_0 : i32, i32
  }
  func.func @transform_3(%arg0: i32) -> (i32, i32) {
    %c0_i32 = arith.constant 0 : i32
    %c0_i32_0 = arith.constant 0 : i32
    %c0_i32_1 = arith.constant 0 : i32
    return %c0_i32, %c0_i32_0 : i32, i32
  }
  func.func @transform_4(%arg0: i32) -> (i32, i32) {
    %c0_i32 = arith.constant 0 : i32
    %c0_i32_0 = arith.constant 0 : i32
    %c0_i32_1 = arith.constant 0 : i32
    return %c0_i32, %c0_i32_0 : i32, i32
  }
  func.func @transform_5(%arg0: i32) -> (i32, i32) {
    %c0_i32 = arith.constant 0 : i32
    %c0_i32_0 = arith.constant 0 : i32
    return %c0_i32, %arg0 : i32, i32
  }
}

</mosaic_0001>

<bundles_post_ra>
// kernel: tpu_custom_call.1
= control target key start
LH: loop header
LB: loop body
LE: loop exit
PB: predicated region body
PF: predicated region fallthrough
CT: control target
= control target key end

     0   :  { %s739_s0 = inlined_call_operand.vmem [shape: f32[2,128], index: 0, kind: input, shape index: {}]   ;;  %s740_s1 = inlined_call_operand.vmem [shape: f32[100,2], index: 1, kind: input, shape index: {}]   ;;  %s741_s2 = inlined_call_operand.vmem [shape: f32[100,1], index: 2, kind: input, shape index: {}]   ;;  %s742_s3 = inlined_call_operand.vmem [shape: f32[100,1], index: 3, kind: input, shape index: {}]   ;;  %s743_s4 = inlined_call_operand.<no memory space> [shape: f32[1,1], index: 4, kind: input, shape index: {}]   ;;  %s744_s5 = inlined_call_operand.hbm [shape: f32[1,128], index: 5, kind: output, shape index: {}]  }
   0x1   :  { %v10_v0 = vstv %s743_s4 }
   0x2   :  { %11 = vst [vmem:[#allocation2] sm:$0x1] %v10_v0 }
   0x3   :  { %v25_v1 = vld [vmem:[%s740_s1 + $0x10] sm:$0xff]  ;;  %v23_v2 = vld [vmem:[%s740_s1] sm:$0xff]  ;;  %v509_v3 = vmov 0   ;;  %v26_v4 = vld [vmem:[%s740_s1 + $0x18] sm:$0xff] }
   0x4   :  { %450 = vset.pattern.permute.xlu1 %v509_v3  ;;  %449 = vset.pattern.permute.xlu0 %v509_v3  ;;  %v24_v5 = vld [vmem:[%s740_s1 + $0x8] sm:$0xff]  ;;  %v27_v7 = vld [vmem:[%s740_s1 + $0x20] sm:$0xff]  ;;  %v30_v8 = vld [vmem:[%s740_s1 + $0x38] sm:$0xff] }
   0x5   :  { %76 = vperm.xlu1 %450, %v25_v1   ;;  %66 = vperm.xlu0 %449, %v23_v2   ;;  %v28_v6 = vld [vmem:[%s740_s1 + $0x28] sm:$0xff]  ;;  %v29_v9 = vld [vmem:[%s740_s1 + $0x30] sm:$0xff] }
   0x9   :  { %81 = vperm.xlu1 %450, %v26_v4   ;;  %71 = vperm.xlu0 %449, %v24_v5  }
   0xd   :  { %91 = vperm.xlu1 %450, %v28_v6   ;;  %86 = vperm.xlu0 %449, %v27_v7  }
   0xe   :  { %12 = vsyncpa [#allocation4], 0  ;;  %v32_v10 = vld [vmem:[%s740_s1 + $0x48] sm:$0xff]  ;;  %v31_v11 = vld [vmem:[%s740_s1 + $0x40] sm:$0xff]  ;;  %v510_v21 = vmov 1   ;;  %vm408_vm0 = vcmask 1043456  }
   0xf   :  { %v34_v12 = vld [vmem:[%s740_s1 + $0x58] sm:$0xff]  ;;  %v33_v13 = vld [vmem:[%s740_s1 + $0x50] sm:$0xff]  ;;  %v36_v14 = vld [vmem:[%s741_s2] sm:$0xff] }
  0x10   :  { %v35_v15 = vld [vmem:[%s740_s1 + $0x60] sm:$0xf]  ;;  %v38_v16 = vld [vmem:[%s741_s2 + $0x10] sm:$0xff]  ;;  %v37_v17 = vld [vmem:[%s741_s2 + $0x8] sm:$0xff] }
  0x11   :  { %101 = vperm.xlu1 %450, %v30_v8   ;;  %96 = vperm.xlu0 %449, %v29_v9   ;;  %v40_v18 = vld [vmem:[%s741_s2 + $0x20] sm:$0xff]  ;;  %v39_v19 = vld [vmem:[%s741_s2 + $0x18] sm:$0xff]  ;;  %v41_v20 = vld [vmem:[%s741_s2 + $0x28] sm:$0xff] }
  0x12   :  { %v44_v22 = vld [vmem:[%s741_s2 + $0x40] sm:$0xff]  ;;  %v42_v24 = vld [vmem:[%s741_s2 + $0x30] sm:$0xff]  ;;  %v43_v25 = vld [vmem:[%s741_s2 + $0x38] sm:$0xff] }
  0x13   :  { %v49_v23 = vld [vmem:[%s742_s3] sm:$0xff]  ;;  %v45_v26 = vld [vmem:[%s741_s2 + $0x48] sm:$0xff]  ;;  %v46_v28 = vld [vmem:[%s741_s2 + $0x50] sm:$0xff] }
  0x14   :  { %v53_v27 = vld [vmem:[%s742_s3 + $0x20] sm:$0xff]  ;;  %v56_v29 = vld [vmem:[%s742_s3 + $0x38] sm:$0xff]  ;;  %v58_v30 = vld [vmem:[%s742_s3 + $0x48] sm:$0xff] }
  0x15   :  { %111 = vperm.xlu1 %450, %v32_v10   ;;  %106 = vperm.xlu0 %449, %v31_v11   ;;  %v50_v31 = vld [vmem:[%s742_s3 + $0x8] sm:$0xff]  ;;  %v60_v32 = vld [vmem:[%s742_s3 + $0x58] sm:$0xff]  ;;  %v62_v34 = vld [vmem:[#allocation2] sm:$0x1] }
  0x16   :  { %v47_v33 = vld [vmem:[%s741_s2 + $0x58] sm:$0xff]  ;;  %v51_v35 = vld [vmem:[%s742_s3 + $0x10] sm:$0xff]  ;;  %v48_v36 = vld [vmem:[%s741_s2 + $0x60] sm:$0xf] }
  0x17   :  { %v52_v37 = vld [vmem:[%s742_s3 + $0x18] sm:$0xff]  ;;  %v54_v38 = vld [vmem:[%s742_s3 + $0x28] sm:$0xff]  ;;  %v55_v39 = vld [vmem:[%s742_s3 + $0x30] sm:$0xff] }
  0x18   :  { %v57_v40 = vld [vmem:[%s742_s3 + $0x40] sm:$0xff]  ;;  %v59_v41 = vld [vmem:[%s742_s3 + $0x50] sm:$0xff] }
  0x19   :  { %121 = vperm.xlu1 %450, %v34_v12   ;;  %116 = vperm.xlu0 %449, %v33_v13   ;;  %v61_v42 = vld [vmem:[%s742_s3 + $0x60] sm:$0xf] }
  0x1d   :  { %148 = vperm.xlu1 %450, %v36_v14   ;;  %126 = vperm.xlu0 %449, %v35_v15  }
  0x21   :  { %158 = vperm.xlu1 %450, %v38_v16   ;;  %153 = vperm.xlu0 %449, %v37_v17  }
  0x25   :  { %168 = vperm.xlu1 %450, %v40_v18   ;;  %163 = vperm.xlu0 %449, %v39_v19  }
  0x29   :  { %451 = vset.pattern.permute.xlu1 %v510_v21  ;;  %173 = vperm.xlu0 %449, %v41_v20  }
  0x2a   :  { %229 = vperm.xlu1 %451, %v24_v5  }
  0x2d   :  { %188 = vperm.xlu0 %449, %v44_v22  }
  0x2e   :  { %233 = vperm.xlu1 %451, %v25_v1  }
  0x31   :  { %321 = vperm.xlu0 %449, %v49_v23  }
  0x32   :  { %241 = vperm.xlu1 %451, %v27_v7  }
  0x35   :  { %456 = vset.pattern.permute.xlu0 %v510_v21 }
  0x36   :  { %245 = vperm.xlu1 %451, %v28_v6   ;;  %225 = vperm.xlu0 %456, %v23_v2  }
  0x3a   :  { %452 = vset.pattern.permute.xlu1 %v509_v3  ;;  %237 = vperm.xlu0 %456, %v26_v4   ;;  %v129_v4 = vlaneseq }
  0x3b   :  { %178 = vperm.xlu1 %452, %v42_v24  }
  0x3c   :  { %v686_v7 = vshrl.u32 %v129_v4, 7 }
  0x3e   :  { %249 = vperm.xlu0 %456, %v29_v9   ;;  %v131_v9 = vsub.s32 0, %v686_v7 }
  0x3f   :  { %183 = vperm.xlu1 %452, %v43_v25  }
  0x42   :  { %261 = vperm.xlu0 %456, %v32_v10   ;;  %v278_v10 = vsub.s32 1, %v686_v7 }
  0x43   :  { %453 = vset.pattern.permute.xlu1 %v510_v21 }
  0x44   :  { %253 = vperm.xlu1 %453, %v30_v8  }
  0x46   :  { %269 = vperm.xlu0 %456, %v34_v12   ;;  %v63_v12 = vld [vmem:[%s739_s0] sm:$0x3]  ;;  %s511_s0 = smov [#allocation3]  }
  0x47   :  { %v695_v14 = vrot.slane %v63_v12, %v131_v9  ;;  %s438_s18 = sshll.u32 %s511_s0, 4  ;;  %s439_s18 = int_to_ptr.vmem [resolvable:$true] %s438_s18 }
  0x48   :  { %257 = vperm.xlu1 %453, %v31_v11   ;;  %s487_s19 = scalar_lea.vmem %s439_s18, 16  ;;  %s491_s20 = scalar_lea.vmem %s439_s18, 32 }
  0x49   :  { %p488_p0 = scmp.ne.s32.totalorder %s439_s18, %s487_s19  ;;  %p492_p1 = scmp.lt.s32.totalorder %s439_s18, %s439_s18 }
  0x4a   :  { %273 = vperm.xlu0 %456, %v35_v15   ;;  %v697_v15 = vrot.slane %v63_v12, %v278_v10  ;;  %p493_p2 = scmp.lt.s32.totalorder %s491_s20, %s487_s19 }
  0x4c   :  { %454 = vset.pattern.permute.xlu1 %v509_v3  ;;  %p494_p3 = por %p493_p2, %p492_p1 }
  0x4d   :  { %193 = vperm.xlu1 %454, %v45_v26  }
  0x4e   :  { %458 = vset.pattern.permute.xlu0 %v509_v3  ;;  %p495_p4 = pnand %p494_p3, %p488_p0 }
  0x4f   :  { %341 = vperm.xlu0 %458, %v53_v27  }
  0x51   :  { %198 = vperm.xlu1 %454, %v46_v28  }
  0x53   :  { %356 = vperm.xlu0 %458, %v56_v29  }
  0x55   :  { %455 = vset.pattern.permute.xlu1 %v510_v21 }
  0x56   :  { %265 = vperm.xlu1 %455, %v33_v13  }
  0x57   :  { %366 = vperm.xlu0 %458, %v58_v30  }
  0x5a   :  { %457 = vset.pattern.permute.xlu1 %v509_v3 }
  0x5b   :  { %326 = vperm.xlu1 %457, %v50_v31   ;;  %376 = vperm.xlu0 %458, %v60_v32  }
  0x5f   :  { %203 = vperm.xlu1 %457, %v47_v33   ;;  %419 = vperm.xlu0 %458, %v62_v34  }
  0x63   :  { %331 = vperm.xlu1 %457, %v51_v35  }
  0x67   :  { %208 = vperm.xlu1 %457, %v48_v36  }
  0x6b   :  { %336 = vperm.xlu1 %457, %v52_v37  }
  0x6f   :  { %346 = vperm.xlu1 %457, %v54_v38  }
  0x73   :  { %351 = vperm.xlu1 %457, %v55_v39  }
  0x77   :  { %361 = vperm.xlu1 %457, %v57_v40  }
  0x7b   :  { %371 = vperm.xlu1 %457, %v59_v41  }
  0x7f   :  { %381 = vperm.xlu1 %457, %v61_v42  }
  0x80   :  { %v77_v43 = vpop.permute.xlu1 %76  ;;  %v67_v44 = vpop.permute.xlu0 %66 }
  0x81   :  { %v133_v19 = vmul.f32 %v695_v14, %v67_v44  ;;  %v135_v24 = vmul.f32 %v695_v14, %v77_v43 }
  0x84   :  { %v82_v45 = vpop.permute.xlu1 %81  ;;  %v72_v46 = vpop.permute.xlu0 %71 }
  0x85   :  { %v134_v16 = vmul.f32 %v695_v14, %v72_v46  ;;  %v136_v31 = vmul.f32 %v695_v14, %v82_v45 }
  0x88   :  { %v92_v47 = vpop.permute.xlu1 %91  ;;  %v87_v48 = vpop.permute.xlu0 %86 }
  0x89   :  { %v137_v32 = vmul.f32 %v695_v14, %v87_v48  ;;  %v138_v38 = vmul.f32 %v695_v14, %v92_v47 }
  0x8c   :  { %v668_v49 = vpop.permute.xlu1 %101  ;;  %v670_v50 = vpop.permute.xlu0 %96 }
  0x8d   :  { %v139_v46 = vmul.f32 %v695_v14, %v670_v50 }
  0x90   :  { %v672_v51 = vpop.permute.xlu1 %111  ;;  %v674_v52 = vpop.permute.xlu0 %106 }
  0x91   :  { %v141_v50 = vmul.f32 %v695_v14, %v674_v52 }
  0x94   :  { %v676_v53 = vpop.permute.xlu1 %121  ;;  %v678_v54 = vpop.permute.xlu0 %116 }
  0x98   :  { %v149_v55 = vpop.permute.xlu1 %148  ;;  %v680_v57 = vpop.permute.xlu0 %126 }
  0x99   :  { %v211_v25 = vadd.f32 %v149_v55, %v133_v19  ;;  %v140_v55 = vmul.f32 %v695_v14, %v668_v49 }
  0x9c   :  { %v159_v56 = vpop.permute.xlu1 %158  ;;  %v154_v59 = vpop.permute.xlu0 %153 }
  0x9d   :  { %v212_v22 = vadd.f32 %v154_v59, %v134_v16  ;;  %v213_v29 = vadd.f32 %v159_v56, %v135_v24 }
  0xa0   :  { %v169_v58 = vpop.permute.xlu1 %168  ;;  %v164_v62 = vpop.permute.xlu0 %163 }
  0xa1   :  { %v214_v36 = vadd.f32 %v164_v62, %v136_v31  ;;  %v215_v40 = vadd.f32 %v169_v58, %v137_v32 }
  0xa4   :  { %v174_v0 = vpop.permute.xlu0 %173 }
  0xa5   :  { %v230_v60 = vpop.permute.xlu1 %229  ;;  %v216_v44 = vadd.f32 %v174_v0, %v138_v38 }
  0xa6   :  { %v281_v20 = vmul.f32 %v697_v15, %v230_v60 }
  0xa8   :  { %v682_v2 = vpop.permute.xlu0 %188  ;;  %v294_v27 = vadd.f32 %v281_v20, %v212_v22 }
  0xa9   :  { %v234_v61 = vpop.permute.xlu1 %233 }
  0xaa   :  { %v282_v26 = vmul.f32 %v697_v15, %v234_v61  ;;  %459 = vtanh.f32 %v294_v27  ;;  %v142_v61 = vmul.f32 %v695_v14, %v672_v51  ;;  %v144_v51 = vmul.f32 %v695_v14, %v676_v53 }
  0xac   :  { %v684_v6 = vpop.permute.xlu0 %321  ;;  %v295_v33 = vadd.f32 %v282_v26, %v213_v29 }
  0xad   :  { %v242_v63 = vpop.permute.xlu1 %241 }
  0xae   :  { %v284_v37 = vmul.f32 %v697_v15, %v242_v63 }
  0xb0   :  { %v297_v45 = vadd.f32 %v284_v37, %v215_v40 }
  0xb1   :  { %v246_v1 = vpop.permute.xlu1 %245  ;;  %v226_v11 = vpop.permute.xlu0 %225 }
  0xb2   :  { %v280_v21 = vmul.f32 %v697_v15, %v226_v11  ;;  %v285_v41 = vmul.f32 %v697_v15, %v246_v1 }
  0xb4   :  { %v293_v30 = vadd.f32 %v280_v21, %v211_v25  ;;  %v298_v56 = vadd.f32 %v285_v41, %v216_v44  ;;  %v145_v21 = vmul.f32 %v695_v14, %v680_v57 }
  0xb5   :  { %v238_v17 = vpop.permute.xlu0 %237 }
  0xb6   :  { %v179_v3 = vpop.permute.xlu1 %178  ;;  %v283_v34 = vmul.f32 %v697_v15, %v238_v17  ;;  %461 = vtanh.f32 %v293_v30 }
  0xb7   :  { %463 = vtanh.f32 %v295_v33  ;;  %v217_v58 = vadd.f32 %v179_v3, %v139_v46  ;;  %v219_v3 = vadd.f32 %v682_v2, %v141_v50  ;;  %v460_v10 = vpop.eup %459 }
  0xb8   :  { %v296_v42 = vadd.f32 %v283_v34, %v214_v36 }
  0xb9   :  { %v250_v28 = vpop.permute.xlu0 %249 }
  0xba   :  { %v184_v5 = vpop.permute.xlu1 %183  ;;  %v286_v48 = vmul.f32 %v697_v15, %v250_v28  ;;  %465 = vtanh.f32 %v296_v42 }
  0xbb   :  { %467 = vtanh.f32 %v297_v45  ;;  %v218_v62 = vadd.f32 %v184_v5, %v140_v55  ;;  %v143_v5 = vmul.f32 %v695_v14, %v678_v54 }
  0xbc   :  { %v299_v63 = vadd.f32 %v286_v48, %v217_v58  ;;  %469 = vtanh.f32 %v298_v56 }
  0xbd   :  { %v262_v39 = vpop.permute.xlu0 %261 }
  0xbe   :  { %v289_v49 = vmul.f32 %v697_v15, %v262_v39  ;;  %471 = vtanh.f32 %v299_v63 }
  0xbf   :  { %v254_v8 = vpop.permute.xlu1 %253 }
  0xc0   :  { %v287_v47 = vmul.f32 %v697_v15, %v254_v8 }
  0xc1   :  { %v270_v59 = vpop.permute.xlu0 %269 }
  0xc2   :  { %v300_v1 = vadd.f32 %v287_v47, %v218_v62  ;;  %v291_v53 = vmul.f32 %v697_v15, %v270_v59 }
  0xc3   :  { %v258_v13 = vpop.permute.xlu1 %257  ;;  %v462_v11 = vpop.eup %461 }
  0xc4   :  { %v288_v0 = vmul.f32 %v697_v15, %v258_v13  ;;  %473 = vtanh.f32 %v300_v1  ;;  %v464_v19 = vpop.eup %463  ;;  %v384_v22 = vmul.f32 %v462_v11, %v684_v6 }
  0xc5   :  { %v274_v12 = vpop.permute.xlu0 %273 }
  0xc6   :  { %v301_v52 = vadd.f32 %v288_v0, %v219_v3 }
  0xc7   :  { %v466_v28 = vpop.eup %465 }
  0xc8   :  { %v194_v18 = vpop.permute.xlu1 %193  ;;  %475 = vtanh.f32 %v301_v52  ;;  %v468_v33 = vpop.eup %467 }
  0xc9   :  { %v220_v4 = vadd.f32 %v194_v18, %v142_v61  ;;  %v470_v34 = vpop.eup %469 }
  0xca   :  { %v342_v29 = vpop.permute.xlu0 %341 }
  0xcb   :  { %v302_v16 = vadd.f32 %v289_v49, %v220_v4  ;;  %v388_v57 = vmul.f32 %v468_v33, %v342_v29  ;;  %v472_v38 = vpop.eup %471 }
  0xcc   :  { %v199_v23 = vpop.permute.xlu1 %198 }
  0xcd   :  { %v221_v2 = vadd.f32 %v199_v23, %v143_v5  ;;  %477 = vtanh.f32 %v302_v16  ;;  %v292_v23 = vmul.f32 %v697_v15, %v274_v12 }
  0xce   :  { %v357_v41 = vpop.permute.xlu0 %356 }
  0xd1   :  { %v266_v35 = vpop.permute.xlu1 %265  ;;  %v474_v40 = vpop.eup %473 }
  0xd2   :  { %v290_v13 = vmul.f32 %v697_v15, %v266_v35  ;;  %v391_v44 = vmul.f32 %v474_v40, %v357_v41  ;;  %v367_v48 = vpop.permute.xlu0 %366 }
  0xd4   :  { %v303_v24 = vadd.f32 %v290_v13, %v221_v2 }
  0xd5   :  { %v476_v15 = vpop.eup %475 }
  0xd6   :  { %v327_v43 = vpop.permute.xlu1 %326  ;;  %479 = vtanh.f32 %v303_v24  ;;  %v377_v0 = vpop.permute.xlu0 %376 }
  0xd7   :  { %v385_v17 = vmul.f32 %v460_v10, %v327_v43 }
  0xd9   :  { %v397_v25 = vadd.f32 %v385_v17, %v384_v22 }
  0xda   :  { %v204_v60 = vpop.permute.xlu1 %203  ;;  %v478_v46 = vpop.eup %477 }
  0xdb   :  { %v222_v18 = vadd.f32 %v204_v60, %v144_v51  ;;  %v393_v59 = vmul.f32 %v478_v46, %v367_v48  ;;  %v420_v16 = vpop.permute.xlu0 %419 }
  0xdd   :  { %v304_v26 = vadd.f32 %v291_v53, %v222_v18  ;;  %v425_v18 = vrot.slane %v420_v16, %v131_v9 }
  0xde   :  { %v332_v8 = vpop.permute.xlu1 %331 }
  0xdf   :  { %v386_v54 = vmul.f32 %v464_v19, %v332_v8  ;;  %481 = vtanh.f32 %v304_v26 }
  0xe1   :  { %v398_v31 = vadd.f32 %v397_v25, %v386_v54 }
  0xe2   :  { %v209_v20 = vpop.permute.xlu1 %208 }
  0xe3   :  { %v223_v27 = vadd.f32 %v209_v20, %v145_v21  ;;  %v480_v58 = vpop.eup %479 }
  0xe5   :  { %v305_v14 = vadd.f32 %v292_v23, %v223_v27 }
  0xe6   :  { %v337_v30 = vpop.permute.xlu1 %336 }
  0xe7   :  { %v387_v32 = vmul.f32 %v466_v28, %v337_v30  ;;  %483 = vtanh.f32 %v305_v14 }
  0xe9   :  { %v399_v6 = vadd.f32 %v398_v31, %v387_v32 }
  0xea   :  { %v347_v35 = vpop.permute.xlu1 %346 }
  0xeb   :  { %v389_v36 = vmul.f32 %v470_v34, %v347_v35  ;;  %v400_v37 = vadd.f32 %v399_v6, %v388_v57 }
  0xec   :  { %v482_v61 = vpop.eup %481 }
  0xed   :  { %v401_v39 = vadd.f32 %v400_v37, %v389_v36  ;;  %v395_v49 = vmul.f32 %v482_v61, %v377_v0 }
  0xee   :  { %v352_v42 = vpop.permute.xlu1 %351 }
  0xef   :  { %v390_v43 = vmul.f32 %v472_v38, %v352_v42 }
  0xf1   :  { %v402_v45 = vadd.f32 %v401_v39, %v390_v43 }
  0xf2   :  { %v362_v55 = vpop.permute.xlu1 %361 }
  0xf3   :  { %v392_v56 = vmul.f32 %v476_v15, %v362_v55  ;;  %v403_v47 = vadd.f32 %v402_v45, %v391_v44 }
  0xf4   :  { %v484_v4 = vpop.eup %483 }
  0xf5   :  { %v404_v60 = vadd.f32 %v403_v47, %v392_v56 }
  0xf6   :  { %v372_v62 = vpop.permute.xlu1 %371 }
  0xf7   :  { %v394_v50 = vmul.f32 %v480_v58, %v372_v62  ;;  %v405_v63 = vadd.f32 %v404_v60, %v393_v59 }
  0xf9   :  { %v406_v1 = vadd.f32 %v405_v63, %v394_v50 }
  0xfa   :  { %v382_v3 = vpop.permute.xlu1 %381 }
  0xfb   :  { %v407_v8 = vadd.f32 %v406_v1, %v395_v49  ;;  %v396_v10 = vmul.f32 %v484_v4, %v382_v3 }
  0xfd   :  { %v409_v51 = vsel %vm408_vm0, %v396_v10, 0.0 }
  0xfe   :  { %v410_v11 = vadd.f32 %v409_v51, %v407_v8 }
 0x100   :  { %v411_v5 = vrot.slane %v410_v11, 4 }
 0x102   :  { %v412_v52 = vadd.f32 %v411_v5, %v410_v11 }
 0x104   :  { %v413_v12 = vrot.slane %v412_v52, 2 }
 0x106   :  { %v414_v13 = vadd.f32 %v413_v12, %v412_v52 }
 0x108   :  { %v415_v17 = vrot.slane %v414_v13, 1 }
 0x10a   :  { %v416_v19 = vadd.f32 %v415_v17, %v414_v13 }
 0x10c   :  { %v426_v2 = vadd.f32 %v425_v18, %v416_v19 }
 0x10e   :  { %v427_v20 = vmul.f32 0.5, %v426_v2 }
 0x110   :  { %485 = vtanh.f32 %v427_v20 }
 0x11d   :  { %v486_v21 = vpop.eup %485 }
 0x11e   :  { %v429_v53 = vmul.f32 0.5, %v486_v21 }
 0x120   :  { %v430_v22 = vadd.f32 0.5, %v429_v53 }
 0x122   :  { %431 = vst [vmem:[#allocation3] sm:$0x1] %v430_v22 }
 0x123   :  { %498 = shalt.err (!%p495_p4)
}
 0x124   :  { %441 = dma.vmem_to_hbm [thread:$0]  %s439_s18, 16, %s744_s5, [#allocation4]  }
 0x125   :  { %507 = dma.done.wait [#allocation4], 16  }
 0x126   :  { %508 = vsyncadd [#allocation4], 4294967280 }
 0x127   :  { %445 = vsyncpa [#allocation4], 1 }

</bundles_post_ra>
